<compile_context>
chip_gen: v5e
topology: v5e:2x2
jax: 0.10.0
libtpu: 0.0.40
codegen_flags: <defaults>
</compile_context>

<pallas_src>
import jax
import jax.numpy as jnp
from jax.experimental import pallas as pl
from jax.experimental.pallas import tpu as pltpu

H1 = 128
H2 = 64
H3 = 1


def mlp_kernel(xt_ref, w1_ref, b1_ref, w2_ref, b2_ref, w3_ref, b3_ref, o_ref):
    # xt_ref: (D, tile_b)  -- batch on the lane axis.
    xt = xt_ref[...]

    # Layer 1: Linear(D, 128) + ReLU   (W1: (128, D), b1: (128, 1))
    h1 = jnp.dot(w1_ref[...], xt, preferred_element_type=jnp.float32)   # (128, tile_b)
    h1 = jnp.maximum(h1 + b1_ref[...], 0.0)

    # Layer 2: Linear(128, 64) + ReLU  (W2: (64, 128), b2: (64, 1))
    h2 = jnp.dot(w2_ref[...], h1, preferred_element_type=jnp.float32)   # (64, tile_b)
    h2 = jnp.maximum(h2 + b2_ref[...], 0.0)

    # Layer 3: Linear(64, 1) + Sigmoid.  out_features == 1 -> VPU multiply +
    # sublane (XLU) reduction instead of an N=1 MXU pass.  w3: (64, 1) column.
    logits = jnp.sum(h2 * w3_ref[...], axis=0, keepdims=True) + b3_ref[0]  # (1, tile_b)

    o_ref[...] = jax.nn.sigmoid(logits).astype(o_ref.dtype)               # lane-dense store


def audio_classifier_forward(x, params, *, tile_b=256):
    """x: [B, D] float32.  params: PyTorch-oriented weights (see init_params)."""
    B, D = x.shape
    w1, b1, w2, b2, w3, b3 = (params["w1"], params["b1"], params["w2"],
                              params["b2"], params["w3"], params["b3"])

    # Present the batch on the lane axis (layout plumbing, not compute).
    xt = x.T                                   # (D, B)

    if B <= tile_b:
        # Whole problem fits in one VMEM-resident invocation: no grid overhead.
        tile = B
        Bp = B
    else:
        # MXU / lane aligned tile; cdiv grid with zero padding (no batch assert).
        tile = max(128, -(-tile_b // 128) * 128)
        Bp = pl.cdiv(B, tile) * tile
        if Bp != B:
            xt = jnp.pad(xt, ((0, 0), (0, Bp - B)))

    grid = (Bp // tile,)

    def full(arr):
        # Weights/biases: full-array blocks, constant index_map -> fetched once,
        # VMEM resident across all grid steps.
        ndim = arr.ndim
        return pl.BlockSpec(arr.shape, lambda i, _n=ndim: (0,) * _n)

    out = pl.pallas_call(
        mlp_kernel,
        out_shape=jax.ShapeDtypeStruct((1, Bp), jnp.float32),
        grid_spec=pltpu.PrefetchScalarGridSpec(
            num_scalar_prefetch=0,
            grid=grid,
            in_specs=[
                pl.BlockSpec((D, tile), lambda i: (0, i)),          # x^T batch tile
                full(w1), full(b1),                                 # layer 1
                full(w2), full(b2),                                 # layer 2
                full(w3),                                           # layer 3 weight column
                pl.BlockSpec(memory_space=pltpu.MemorySpace.SMEM),  # layer 3 bias scalar
            ],
            out_specs=pl.BlockSpec((1, tile), lambda i: (0, i)),    # lane-dense output slab
        ),
        compiler_params=pltpu.CompilerParams(
            dimension_semantics=("parallel",)),
    )(xt, w1, b1, w2, b2, w3, b3)

    return out[0, :B].reshape(B, 1)


def init_params(key, input_size):
    """PyTorch nn.Linear-style init, stored in (out_features, in_features) layout."""
    def linear(key, fan_in, fan_out):
        kw, kb = jax.random.split(key)
        bound = 1.0 / jnp.sqrt(fan_in)
        w = jax.random.uniform(kw, (fan_out, fan_in), jnp.float32, -bound, bound)
        b = jax.random.uniform(kb, (fan_out, 1), jnp.float32, -bound, bound)
        return w, b

    k1, k2, k3 = jax.random.split(key, 3)
    w1, b1 = linear(k1, input_size, H1)          # (128, D), (128, 1)
    w2, b2 = linear(k2, H1, H2)                  # (64, 128), (64, 1)
    w3, b3 = linear(k3, H2, H3)                  # (1, 64),   (1, 1)
    return {
        "w1": w1, "b1": b1,
        "w2": w2, "b2": b2,
        "w3": w3.T,                              # (64, 1) column for the VPU reduction
        "b3": b3.reshape(1),                     # scalar, lives in SMEM
    }


def reference_forward(x, p):
    h1 = jnp.maximum(x @ p["w1"].T + p["b1"].T, 0.0)
    h2 = jnp.maximum(h1 @ p["w2"].T + p["b2"].T, 0.0)
    logits = jnp.sum(h2 * p["w3"].T, axis=-1, keepdims=True) + p["b3"]
    return jax.nn.sigmoid(logits)


if __name__ == "__main__":
    input_size = 32
    batch = 16

    key = jax.random.PRNGKey(0)
    kx, kp = jax.random.split(key)
    x = jax.random.normal(kx, (batch, input_size), jnp.float32)
    params = init_params(kp, input_size)

    # Small batch: single-step, fully VMEM-resident path.
    out = jax.block_until_ready(audio_classifier_forward(x, params))
    ref = reference_forward(x, params)
    assert out.shape == (batch, 1)
    assert jnp.allclose(out, ref, atol=1e-4, rtol=1e-4), "mismatch vs. reference (small batch)"

    # Larger batch: exercises the MXU-aligned tiled grid + zero-padding path.
    x2 = jax.random.normal(jax.random.PRNGKey(1), (200, input_size), jnp.float32)
    out2 = jax.block_until_ready(audio_classifier_forward(x2, params, tile_b=128))
    ref2 = reference_forward(x2, params)
    assert out2.shape == (200, 1)
    assert jnp.allclose(out2, ref2, atol=1e-4, rtol=1e-4), "mismatch vs. reference (tiled batch)"

    print("KERNEL_OK")
</pallas_src>

<mosaic_0001>
module attributes {stable_mosaic.version = 11 : i64} {
  func.func @mlp_kernel(%arg0: i32, %arg1: memref<32x16xf32, #tpu.memory_space<vmem>>, %arg2: memref<128x32xf32, #tpu.memory_space<vmem>>, %arg3: memref<128x1xf32, #tpu.memory_space<vmem>>, %arg4: memref<64x128xf32, #tpu.memory_space<vmem>>, %arg5: memref<64x1xf32, #tpu.memory_space<vmem>>, %arg6: memref<64x1xf32, #tpu.memory_space<vmem>>, %arg7: memref<1xf32, #tpu.memory_space<smem>>, %arg8: memref<1x16xf32, #tpu.memory_space<vmem>>) attributes {dimension_semantics = [#tpu.dimension_semantics<parallel>], iteration_bounds = array<i64: 1>, scalar_prefetch = 0 : i64, scratch_operands = 0 : i64, tpu.core_type = #tpu.core_type<tc>, window_params = [{transform_indices = @transform_0, window_bounds = array<i64: 32, 16>}, {pipeline_mode = #tpu.pipeline_mode<synchronous>, transform_indices = @transform_1, window_bounds = array<i64: 128, 32>}, {pipeline_mode = #tpu.pipeline_mode<synchronous>, transform_indices = @transform_2, window_bounds = array<i64: 128, 1>}, {pipeline_mode = #tpu.pipeline_mode<synchronous>, transform_indices = @transform_3, window_bounds = array<i64: 64, 128>}, {pipeline_mode = #tpu.pipeline_mode<synchronous>, transform_indices = @transform_4, window_bounds = array<i64: 64, 1>}, {pipeline_mode = #tpu.pipeline_mode<synchronous>, transform_indices = @transform_5, window_bounds = array<i64: 64, 1>}, {transform_indices = @transform_6, window_bounds = array<i64: 1>}, {transform_indices = @transform_7, window_bounds = array<i64: 1, 16>}]} {
    %c0 = arith.constant 0 : index
    %c0_0 = arith.constant 0 : index
    %0 = vector.load %arg1[%c0, %c0_0] : memref<32x16xf32, #tpu.memory_space<vmem>>, vector<32x16xf32>
    %c0_1 = arith.constant 0 : index
    %c0_2 = arith.constant 0 : index
    %1 = vector.load %arg2[%c0_1, %c0_2] : memref<128x32xf32, #tpu.memory_space<vmem>>, vector<128x32xf32>
    %cst = arith.constant dense<0.000000e+00> : vector<128x16xf32>
    %2 = tpu.matmul %1, %0, %cst {dimension_numbers = #tpu.dot_dimension_numbers<[1], [0], [0], [1], [0, 0, 1, 1], [], []>} : vector<128x32xf32>, vector<32x16xf32>, vector<128x16xf32> -> vector<128x16xf32>
    %c0_3 = arith.constant 0 : index
    %c0_4 = arith.constant 0 : index
    %3 = vector.load %arg3[%c0_3, %c0_4] : memref<128x1xf32, #tpu.memory_space<vmem>>, vector<128x1xf32>
    %4 = vector.broadcast %3 : vector<128x1xf32> to vector<128x16xf32>
    %5 = arith.addf %2, %4 : vector<128x16xf32>
    %cst_5 = arith.constant 0.000000e+00 : f32
    %6 = vector.broadcast %cst_5 : f32 to vector<128x16xf32>
    %7 = arith.maximumf %5, %6 : vector<128x16xf32>
    %c0_6 = arith.constant 0 : index
    %c0_7 = arith.constant 0 : index
    %8 = vector.load %arg4[%c0_6, %c0_7] : memref<64x128xf32, #tpu.memory_space<vmem>>, vector<64x128xf32>
    %cst_8 = arith.constant dense<0.000000e+00> : vector<64x16xf32>
    %9 = tpu.matmul %8, %7, %cst_8 {dimension_numbers = #tpu.dot_dimension_numbers<[1], [0], [0], [1], [0, 0, 1, 1], [], []>} : vector<64x128xf32>, vector<128x16xf32>, vector<64x16xf32> -> vector<64x16xf32>
    %c0_9 = arith.constant 0 : index
    %c0_10 = arith.constant 0 : index
    %10 = vector.load %arg5[%c0_9, %c0_10] : memref<64x1xf32, #tpu.memory_space<vmem>>, vector<64x1xf32>
    %11 = vector.broadcast %10 : vector<64x1xf32> to vector<64x16xf32>
    %12 = arith.addf %9, %11 : vector<64x16xf32>
    %cst_11 = arith.constant 0.000000e+00 : f32
    %13 = vector.broadcast %cst_11 : f32 to vector<64x16xf32>
    %14 = arith.maximumf %12, %13 : vector<64x16xf32>
    %c0_12 = arith.constant 0 : index
    %c0_13 = arith.constant 0 : index
    %15 = vector.load %arg6[%c0_12, %c0_13] : memref<64x1xf32, #tpu.memory_space<vmem>>, vector<64x1xf32>
    %16 = vector.broadcast %15 : vector<64x1xf32> to vector<64x16xf32>
    %17 = arith.mulf %14, %16 : vector<64x16xf32>
    %cst_14 = arith.constant dense<0.000000e+00> : vector<16xf32>
    %18 = vector.multi_reduction <add>, %17, %cst_14 [0] : vector<64x16xf32> to vector<16xf32>
    %19 = vector.shape_cast %18 : vector<16xf32> to vector<1x16xf32>
    %c0_15 = arith.constant 0 : index
    %20 = memref.load %arg7[%c0_15] : memref<1xf32, #tpu.memory_space<smem>>
    %21 = vector.broadcast %20 : f32 to vector<1x16xf32>
    %22 = arith.addf %19, %21 : vector<1x16xf32>
    %23 = arith.negf %22 : vector<1x16xf32>
    %24 = math.exp %23 : vector<1x16xf32>
    %cst_16 = arith.constant 1.000000e+00 : f32
    %25 = vector.broadcast %cst_16 : f32 to vector<1x16xf32>
    %26 = arith.addf %25, %24 : vector<1x16xf32>
    %27 = arith.divf %25, %26 : vector<1x16xf32>
    %c0_17 = arith.constant 0 : index
    %c0_18 = arith.constant 0 : index
    %28 = vector.load %arg8[%c0_17, %c0_18] : memref<1x16xf32, #tpu.memory_space<vmem>>, vector<1x16xf32>
    tpu.vector_store %arg8[%c0_17, %c0_18], %27 {strides = array<i32>} : memref<1x16xf32, #tpu.memory_space<vmem>>, vector<1x16xf32>,
    return
  }
  func.func @transform_0(%arg0: i32) -> (i32, i32) {
    %c0_i32 = arith.constant 0 : i32
    %c0_i32_0 = arith.constant 0 : i32
    return %c0_i32, %arg0 : i32, i32
  }
  func.func @transform_1(%arg0: i32) -> (i32, i32) {
    %c0_i32 = arith.constant 0 : i32
    %c0_i32_0 = arith.constant 0 : i32
    %c0_i32_1 = arith.constant 0 : i32
    return %c0_i32, %c0_i32_0 : i32, i32
  }
  func.func @transform_2(%arg0: i32) -> (i32, i32) {
    %c0_i32 = arith.constant 0 : i32
    %c0_i32_0 = arith.constant 0 : i32
    %c0_i32_1 = arith.constant 0 : i32
    return %c0_i32, %c0_i32_0 : i32, i32
  }
  func.func @transform_3(%arg0: i32) -> (i32, i32) {
    %c0_i32 = arith.constant 0 : i32
    %c0_i32_0 = arith.constant 0 : i32
    %c0_i32_1 = arith.constant 0 : i32
    return %c0_i32, %c0_i32_0 : i32, i32
  }
  func.func @transform_4(%arg0: i32) -> (i32, i32) {
    %c0_i32 = arith.constant 0 : i32
    %c0_i32_0 = arith.constant 0 : i32
    %c0_i32_1 = arith.constant 0 : i32
    return %c0_i32, %c0_i32_0 : i32, i32
  }
  func.func @transform_5(%arg0: i32) -> (i32, i32) {
    %c0_i32 = arith.constant 0 : i32
    %c0_i32_0 = arith.constant 0 : i32
    %c0_i32_1 = arith.constant 0 : i32
    return %c0_i32, %c0_i32_0 : i32, i32
  }
  func.func @transform_6(%arg0: i32) -> i32 {
    %c0_i32 = arith.constant 0 : i32
    %c0_i32_0 = arith.constant 0 : i32
    return %c0_i32 : i32
  }
  func.func @transform_7(%arg0: i32) -> (i32, i32) {
    %c0_i32 = arith.constant 0 : i32
    %c0_i32_0 = arith.constant 0 : i32
    return %c0_i32, %arg0 : i32, i32
  }
}

</mosaic_0001>

<bundles_post_ra>
// kernel: tpu_custom_call.1
= control target key start
LH: loop header
LB: loop body
LE: loop exit
PB: predicated region body
PF: predicated region fallthrough
CT: control target
= control target key end

     0   :  { %v569_v3 = vmov 0   ;;  %vm144_vm0 = vcmask 261120   ;;  %s830_s0 = inlined_call_operand.vmem [shape: f32[32,16], index: 0, kind: input, shape index: {}]   ;;  %s831_s1 = inlined_call_operand.vmem [shape: f32[128,32], index: 1, kind: input, shape index: {}]   ;;  %s832_s2 = inlined_call_operand.vmem [shape: f32[128,1], index: 2, kind: input, shape index: {}]   ;;  %s833_s3 = inlined_call_operand.vmem [shape: f32[64,128], index: 3, kind: input, shape index: {}]   ;;  %s834_s4 = inlined_call_operand.vmem [shape: f32[64,1], index: 4, kind: input, shape index: {}]   ;;  %s835_s5 = inlined_call_operand.vmem [shape: f32[64,1], index: 5, kind: input, shape index: {}]   ;;  %s836_s6 = inlined_call_operand.<no memory space> [shape: f32[1], index: 6, kind: input, shape index: {}]   ;;  %s837_s7 = inlined_call_operand.hbm [shape: f32[1,16], index: 7, kind: output, shape index: {}]  }
   0x1   :  { %v31_v0 = vld [vmem:[%s830_s0 + $0x18] sm:$0xff]  ;;  %v61_v2 = vld [vmem:[%s832_s2 + $0x68] sm:$0xff]  ;;  %536 = vset.pattern.permute.xlu0 %v569_v3  ;;  %v30_v4 = vld [vmem:[%s830_s0 + $0x10] sm:$0xff]  ;;  %537 = vset.pattern.permute.xlu1 %v569_v3 }
   0x2   :  { %v63_v1 = vld [vmem:[%s832_s2 + $0x78] sm:$0xff]  ;;  %514 = vmatpush.msra.mxu2 %v31_v0  ;;  %v29_v5 = vld [vmem:[%s830_s0 + $0x8] sm:$0xff]  ;;  %131 = vperm.xlu1 %537, %v61_v2   ;;  %v28_v6 = vld [vmem:[%s830_s0] sm:$0xff] }
   0x3   :  { %141 = vperm.xlu0 %536, %v63_v1   ;;  %205 = vmatpush.msra.mxu0 %v31_v0  ;;  %v39_v7 = vld [vmem:[%s831_s1 + $0x38] sm:$0xff]  ;;  %v62_v9 = vld [vmem:[%s832_s2 + $0x70] sm:$0xff] }
   0x4   :  { %515 = vmatpush.msra.mxu2 %v30_v4  ;;  %538 = vset.pattern.permute.xlu2 %v569_v3  ;;  %v59_v8 = vld [vmem:[%s832_s2 + $0x58] sm:$0xff] }
   0x5   :  { %206 = vmatpush.msra.mxu0 %v30_v4  ;;  %121 = vperm.xlu2 %538, %v59_v8  }
   0x6   :  { %516 = vmatpush.msra.mxu2 %v29_v5 }
   0x8   :  { %517 = vmatpush.msra.mxu2 %v28_v6 }
   0x9   :  { %13 = vsyncpa [#allocation4], 0  ;;  %504 = vmatmul.msk.f32.vlgmr.msra.gmra.mxu2 %vm144_vm0, %v39_v7  ;;  %v60_v10 = vld [vmem:[%s832_s2 + $0x60] sm:$0xff]  ;;  %207 = vmatpush.msra.mxu0 %v29_v5  ;;  %v58_v12 = vld [vmem:[%s832_s2 + $0x50] sm:$0xff]  ;;  %vm435_vm1 = vcmask 130048   ;;  %s570_s19 = smov [#allocation3]  }
   0xa   :  { %v32_v11 = vld [vmem:[%s831_s1] sm:$0xff]  ;;  %126 = vperm.xlu1 %537, %v60_v10   ;;  %v57_v14 = vld [vmem:[%s832_s2 + $0x48] sm:$0xff]  ;;  %v55_v17 = vld [vmem:[%s832_s2 + $0x38] sm:$0xff]  ;;  %s486_s20 = sshll.u32 %s570_s19, 4  ;;  %vm479_vm5 = vcmask 122880   ;;  %s487_s20 = int_to_ptr.vmem [resolvable:$true] %s486_s20 }
   0xb   :  { %136 = vperm.xlu0 %536, %v62_v9   ;;  %208 = vmatpush.msra.mxu0 %v28_v6  ;;  %v40_v13 = vld [vmem:[%s831_s1 + $0x40] sm:$0xff]  ;;  %v33_v16 = vld [vmem:[%s831_s1 + $0x8] sm:$0xff]  ;;  %v54_v19 = vld [vmem:[%s832_s2 + $0x30] sm:$0xff] }
   0xc   :  { %497 = vmatmul.msk.f32.vlgmr.msra.gmra.mxu0 %vm144_vm0, %v32_v11  ;;  %v56_v15 = vld [vmem:[%s832_s2 + $0x40] sm:$0xff]  ;;  %v41_v18 = vld [vmem:[%s831_s1 + $0x48] sm:$0xff]  ;;  %v34_v21 = vld [vmem:[%s831_s1 + $0x10] sm:$0xff] }
   0xd   :  { %116 = vperm.xlu2 %538, %v58_v12   ;;  %v53_v20 = vld [vmem:[%s832_s2 + $0x28] sm:$0xff]  ;;  %v52_v22 = vld [vmem:[%s832_s2 + $0x20] sm:$0xff]  ;;  %v42_v23 = vld [vmem:[%s831_s1 + $0x50] sm:$0xff] }
   0xe   :  { %v51_v24 = vld [vmem:[%s832_s2 + $0x18] sm:$0xff]  ;;  %v50_v25 = vld [vmem:[%s832_s2 + $0x10] sm:$0xff]  ;;  %v49_v27 = vld [vmem:[%s832_s2 + $0x8] sm:$0xff] }
   0xf   :  { %v35_v26 = vld [vmem:[%s831_s1 + $0x18] sm:$0xff]  ;;  %v48_v29 = vld [vmem:[%s832_s2] sm:$0xff]  ;;  %v283_v32 = vld [vmem:[%s834_s4 + $0x8] sm:$0xff] }
  0x10   :  { %v43_v28 = vld [vmem:[%s831_s1 + $0x58] sm:$0xff]  ;;  %v282_v30 = vld [vmem:[%s834_s4] sm:$0xff]  ;;  %v284_v34 = vld [vmem:[%s834_s4 + $0x10] sm:$0xff] }
  0x11   :  { %505 = vmatmul.msk.f32.gmra.mxu2 %vm144_vm0, %v40_v13  ;;  %v36_v31 = vld [vmem:[%s831_s1 + $0x20] sm:$0xff]  ;;  %v285_v35 = vld [vmem:[%s834_s4 + $0x18] sm:$0xff]  ;;  %v37_v36 = vld [vmem:[%s831_s1 + $0x28] sm:$0xff] }
  0x12   :  { %106 = vperm.xlu1 %537, %v56_v15   ;;  %v44_v33 = vld [vmem:[%s831_s1 + $0x60] sm:$0xff]  ;;  %v45_v38 = vld [vmem:[%s831_s1 + $0x68] sm:$0xff]  ;;  %v38_v41 = vld [vmem:[%s831_s1 + $0x30] sm:$0xff] }
  0x13   :  { %111 = vperm.xlu0 %536, %v57_v14   ;;  %v379_v37 = vld [vmem:[%s835_s5] sm:$0xff]  ;;  %v380_v39 = vld [vmem:[%s835_s5 + $0x8] sm:$0xff]  ;;  %v381_v42 = vld [vmem:[%s835_s5 + $0x10] sm:$0xff] }
  0x14   :  { %498 = vmatmul.msk.f32.gmra.mxu0 %vm144_vm0, %v33_v16  ;;  %v286_v40 = vld [vmem:[%s834_s4 + $0x20] sm:$0xff]  ;;  %v46_v43 = vld [vmem:[%s831_s1 + $0x70] sm:$0xff]  ;;  %v287_v44 = vld [vmem:[%s834_s4 + $0x28] sm:$0xff] }
  0x15   :  { %101 = vperm.xlu2 %538, %v55_v17   ;;  %v382_v45 = vld [vmem:[%s835_s5 + $0x18] sm:$0xff]  ;;  %v288_v46 = vld [vmem:[%s834_s4 + $0x30] sm:$0xff]  ;;  %v383_v48 = vld [vmem:[%s835_s5 + $0x20] sm:$0xff] }
  0x16   :  { %v47_v47 = vld [vmem:[%s831_s1 + $0x78] sm:$0xff]  ;;  %v384_v50 = vld [vmem:[%s835_s5 + $0x28] sm:$0xff]  ;;  %v385_v51 = vld [vmem:[%s835_s5 + $0x30] sm:$0xff] }
  0x17   :  { %v289_v49 = vld [vmem:[%s834_s4 + $0x38] sm:$0xff] }
  0x18   :  { %v386_v52 = vld [vmem:[%s835_s5 + $0x38] sm:$0xff] }
  0x19   :  { %506 = vmatmul.msk.f32.gmra.mxu2 %vm144_vm0, %v41_v18 }
  0x1a   :  { %91 = vperm.xlu1 %537, %v53_v20  }
  0x1b   :  { %96 = vperm.xlu0 %536, %v54_v19  }
  0x1c   :  { %499 = vmatmul.msk.f32.gmra.mxu0 %vm144_vm0, %v34_v21 }
  0x1d   :  { %86 = vperm.xlu2 %538, %v52_v22  }
  0x21   :  { %507 = vmatmul.msk.f32.gmra.mxu2 %vm144_vm0, %v42_v23 }
  0x22   :  { %76 = vperm.xlu1 %537, %v50_v25  }
  0x23   :  { %81 = vperm.xlu0 %536, %v51_v24  }
  0x24   :  { %500 = vmatmul.msk.f32.gmra.mxu0 %vm144_vm0, %v35_v26 }
  0x25   :  { %71 = vperm.xlu2 %538, %v49_v27  }
  0x29   :  { %508 = vmatmul.msk.f32.gmra.mxu2 %vm144_vm0, %v43_v28 }
  0x2a   :  { %292 = vperm.xlu1 %537, %v282_v30  }
  0x2b   :  { %66 = vperm.xlu0 %536, %v48_v29  }
  0x2c   :  { %501 = vmatmul.msk.f32.gmra.mxu0 %vm144_vm0, %v36_v31 }
  0x2d   :  { %297 = vperm.xlu2 %538, %v283_v32  }
  0x31   :  { %509 = vmatmul.msk.f32.gmra.mxu2 %vm144_vm0, %v44_v33 }
  0x32   :  { %307 = vperm.xlu1 %537, %v285_v35  }
  0x33   :  { %302 = vperm.xlu0 %536, %v284_v34  }
  0x34   :  { %502 = vmatmul.msk.f32.gmra.mxu0 %vm144_vm0, %v37_v36 }
  0x35   :  { %389 = vperm.xlu2 %538, %v379_v37  }
  0x39   :  { %510 = vmatmul.msk.f32.gmra.mxu2 %vm144_vm0, %v45_v38 }
  0x3a   :  { %312 = vperm.xlu1 %537, %v286_v40  }
  0x3b   :  { %394 = vperm.xlu0 %536, %v380_v39  }
  0x3c   :  { %503 = vmatmul.msk.f32.gmra.mxu0 %vm144_vm0, %v38_v41 }
  0x3d   :  { %399 = vperm.xlu2 %538, %v381_v42  }
  0x41   :  { %511 = vmatmul.msk.f32.gmra.mxu2 %vm144_vm0, %v46_v43 }
  0x42   :  { %404 = vperm.xlu1 %537, %v382_v45  }
  0x43   :  { %317 = vperm.xlu0 %536, %v287_v44  }
  0x45   :  { %322 = vperm.xlu2 %538, %v288_v46  }
  0x49   :  { %512 = vmatmul.msk.f32.gmra.mxu2 %vm144_vm0, %v47_v47 }
  0x4a   :  { %327 = vperm.xlu1 %537, %v289_v49  }
  0x4b   :  { %409 = vperm.xlu0 %536, %v383_v48  }
  0x4d   :  { %414 = vperm.xlu2 %538, %v384_v50  }
  0x52   :  { %424 = vperm.xlu1 %537, %v386_v52  }
  0x53   :  { %419 = vperm.xlu0 %536, %v385_v51  }
  0x5f   :  { %v122_v2 = vpop.permute.xlu2 %121 }
  0x67   :  { %v117_v7 = vpop.permute.xlu2 %116 }
  0x6f   :  { %v102_v20 = vpop.permute.xlu2 %101 }
  0x74   :  { %v132_v63 = vpop.permute.xlu1 %131 }
  0x75   :  { %v142_v62 = vpop.permute.xlu0 %141 }
  0x77   :  { %v87_v32 = vpop.permute.xlu2 %86 }
  0x7c   :  { %v127_v5 = vpop.permute.xlu1 %126 }
  0x7d   :  { %v137_v3 = vpop.permute.xlu0 %136 }
  0x7f   :  { %v72_v45 = vpop.permute.xlu2 %71 }
  0x84   :  { %v107_v14 = vpop.permute.xlu1 %106 }
  0x85   :  { %v112_v8 = vpop.permute.xlu0 %111 }
  0x89   :  { %v783_v56 = vpop.f32.mrf.mxu0 }
  0x8c   :  { %v231_v53 = vpop.f32.mrf.mxu2  ;;  %v92_v28 = vpop.permute.xlu1 %91 }
  0x8d   :  { %v97_v21 = vpop.permute.xlu0 %96  ;;  %v232_v30 = vadd.f32 %v231_v53, %v102_v20  ;;  %v274_v53 = vld [vmem:[%s833_s3] sm:$0xff] }
  0x8f   :  { %v265_v36 = vmax.f32 %v232_v30, 0.0 }
  0x91   :  { %v785_v58 = vpop.f32.mrf.mxu0 }
  0x92   :  { %v214_v46 = vadd.f32 %v785_v58, %v72_v45  ;;  %v281_v58 = vld [vmem:[%s833_s3 + $0x38] sm:$0xff] }
  0x94   :  { %v234_v54 = vpop.f32.mrf.mxu2  ;;  %v77_v42 = vpop.permute.xlu1 %76  ;;  %v259_v51 = vmax.f32 %v214_v46, 0.0 }
  0x95   :  { %v235_v26 = vadd.f32 %v234_v54, %v107_v14  ;;  %v82_v35 = vpop.permute.xlu0 %81  ;;  %v279_v54 = vld [vmem:[%s833_s3 + $0x28] sm:$0xff] }
  0x97   :  { %v266_v33 = vmax.f32 %v235_v26, 0.0 }
  0x99   :  { %v787_v60 = vpop.f32.mrf.mxu0 }
  0x9a   :  { %v217_v43 = vadd.f32 %v787_v60, %v77_v42  ;;  %v278_v60 = vld [vmem:[%s833_s3 + $0x20] sm:$0xff] }
  0x9c   :  { %v237_v55 = vpop.f32.mrf.mxu2  ;;  %v260_v50 = vmax.f32 %v217_v43, 0.0 }
  0x9d   :  { %v238_v24 = vadd.f32 %v237_v55, %v112_v8  ;;  %v67_v48 = vpop.permute.xlu0 %66  ;;  %v275_v55 = vld [vmem:[%s833_s3 + $0x8] sm:$0xff] }
  0x9e   :  { %v211_v49 = vadd.f32 %v783_v56, %v67_v48  ;;  %v280_v56 = vld [vmem:[%s833_s3 + $0x30] sm:$0xff] }
  0x9f   :  { %v267_v31 = vmax.f32 %v238_v24, 0.0 }
  0xa0   :  { %v258_v52 = vmax.f32 %v211_v49, 0.0 }
  0xa1   :  { %v219_v0 = vpop.f32.mrf.mxu0 }
  0xa2   :  { %v220_v40 = vadd.f32 %v219_v0, %v82_v35 }
  0xa4   :  { %v240_v57 = vpop.f32.mrf.mxu2  ;;  %v261_v47 = vmax.f32 %v220_v40, 0.0 }
  0xa5   :  { %v241_v22 = vadd.f32 %v240_v57, %v117_v7  ;;  %v276_v57 = vld [vmem:[%s833_s3 + $0x10] sm:$0xff] }
  0xa7   :  { %v268_v27 = vmax.f32 %v241_v22, 0.0 }
  0xa9   :  { %v222_v6 = vpop.f32.mrf.mxu0 }
  0xaa   :  { %v223_v38 = vadd.f32 %v222_v6, %v87_v32 }
  0xac   :  { %v243_v59 = vpop.f32.mrf.mxu2  ;;  %v262_v44 = vmax.f32 %v223_v38, 0.0 }
  0xad   :  { %v244_v18 = vadd.f32 %v243_v59, %v122_v2  ;;  %v277_v59 = vld [vmem:[%s833_s3 + $0x18] sm:$0xff] }
  0xaf   :  { %v269_v25 = vmax.f32 %v244_v18, 0.0 }
  0xb1   :  { %v225_v15 = vpop.f32.mrf.mxu0 }
  0xb2   :  { %v226_v37 = vadd.f32 %v225_v15, %v92_v28 }
  0xb4   :  { %v246_v61 = vpop.f32.mrf.mxu2  ;;  %v263_v41 = vmax.f32 %v226_v37, 0.0 }
  0xb5   :  { %v247_v16 = vadd.f32 %v246_v61, %v127_v5  ;;  %v293_v61 = vpop.permute.xlu1 %292 }
  0xb7   :  { %v270_v23 = vmax.f32 %v247_v16, 0.0 }
  0xb9   :  { %v228_v29 = vpop.f32.mrf.mxu0 }
  0xba   :  { %v229_v34 = vadd.f32 %v228_v29, %v97_v21 }
  0xbc   :  { %v249_v1 = vpop.f32.mrf.mxu2  ;;  %v264_v39 = vmax.f32 %v229_v34, 0.0 }
  0xbd   :  { %v250_v12 = vadd.f32 %v249_v1, %v132_v63  ;;  %v303_v63 = vpop.permute.xlu0 %302  ;;  %v308_v0 = vpop.permute.xlu1 %307 }
  0xbf   :  { %v271_v19 = vmax.f32 %v250_v12, 0.0 }
  0xc4   :  { %v252_v4 = vpop.f32.mrf.mxu2 }
  0xc5   :  { %v253_v10 = vadd.f32 %v252_v4, %v137_v3  ;;  %v395_v3 = vpop.permute.xlu0 %394  ;;  %v313_v5 = vpop.permute.xlu1 %312 }
  0xc7   :  { %v272_v17 = vmax.f32 %v253_v10, 0.0 }
  0xcc   :  { %v255_v9 = vpop.f32.mrf.mxu2 }
  0xcd   :  { %v256_v11 = vadd.f32 %v255_v9, %v142_v62  ;;  %v298_v62 = vpop.permute.xlu2 %297  ;;  %v318_v9 = vpop.permute.xlu0 %317 }
  0xcf   :  { %v273_v13 = vmax.f32 %v256_v11, 0.0  ;;  %v405_v11 = vpop.permute.xlu1 %404 }
  0xd1   :  { %330 = vmatpush.msra.mxu1 %v273_v13  ;;  %518 = vmatpush.msra.mxu3 %v273_v13 }
  0xd3   :  { %331 = vmatpush.msra.mxu1 %v272_v17  ;;  %519 = vmatpush.msra.mxu3 %v272_v17 }
  0xd5   :  { %332 = vmatpush.msra.mxu1 %v271_v19  ;;  %520 = vmatpush.msra.mxu3 %v271_v19  ;;  %v390_v2 = vpop.permute.xlu2 %389 }
  0xd7   :  { %333 = vmatpush.msra.mxu1 %v270_v23  ;;  %521 = vmatpush.msra.mxu3 %v270_v23  ;;  %v410_v23 = vpop.permute.xlu0 %409 }
  0xd9   :  { %334 = vmatpush.msra.mxu1 %v269_v25  ;;  %522 = vmatpush.msra.mxu3 %v269_v25 }
  0xdb   :  { %335 = vmatpush.msra.mxu1 %v268_v27  ;;  %523 = vmatpush.msra.mxu3 %v268_v27  ;;  %v328_v27 = vpop.permute.xlu1 %327 }
  0xdd   :  { %336 = vmatpush.msra.mxu1 %v267_v31  ;;  %524 = vmatpush.msra.mxu3 %v267_v31  ;;  %v400_v7 = vpop.permute.xlu2 %399 }
  0xdf   :  { %337 = vmatpush.msra.mxu1 %v266_v33  ;;  %525 = vmatpush.msra.mxu3 %v266_v33 }
  0xe1   :  { %338 = vmatpush.msra.mxu1 %v265_v36  ;;  %526 = vmatpush.msra.mxu3 %v265_v36 }
  0xe3   :  { %339 = vmatpush.msra.mxu1 %v264_v39  ;;  %527 = vmatpush.msra.mxu3 %v264_v39 }
  0xe5   :  { %340 = vmatpush.msra.mxu1 %v263_v41  ;;  %528 = vmatpush.msra.mxu3 %v263_v41  ;;  %v323_v20 = vpop.permute.xlu2 %322 }
  0xe7   :  { %341 = vmatpush.msra.mxu1 %v262_v44  ;;  %529 = vmatpush.msra.mxu3 %v262_v44 }
  0xe9   :  { %342 = vmatpush.msra.mxu1 %v261_v47  ;;  %530 = vmatpush.msra.mxu3 %v261_v47  ;;  %v420_v47 = vpop.permute.xlu0 %419 }
  0xeb   :  { %343 = vmatpush.msra.mxu1 %v260_v50  ;;  %531 = vmatpush.msra.mxu3 %v260_v50 }
  0xed   :  { %344 = vmatpush.msra.mxu1 %v259_v51  ;;  %532 = vmatpush.msra.mxu3 %v259_v51  ;;  %v415_v42 = vpop.permute.xlu2 %414  ;;  %v425_v51 = vpop.permute.xlu1 %424 }
  0xef   :  { %345 = vmatpush.msra.mxu1 %v258_v52  ;;  %533 = vmatpush.msra.mxu3 %v258_v52 }
  0xf0   :  { %346 = vmatmul.f32.vlgmr.msra.gmra.mxu1 %v274_v53  ;;  %361 = vmatmul.f32.vlgmr.msra.gmra.mxu3 %v279_v54 }
  0xf8   :  { %349 = vmatmul.f32.gmra.mxu1 %v275_v55  ;;  %364 = vmatmul.f32.gmra.mxu3 %v280_v56 }
 0x100   :  { %352 = vmatmul.f32.gmra.mxu1 %v276_v57  ;;  %367 = vmatmul.f32.gmra.mxu3 %v281_v58 }
 0x108   :  { %355 = vmatmul.f32.gmra.mxu1 %v277_v59 }
 0x110   :  { %358 = vmatmul.f32.gmra.mxu1 %v278_v60 }
 0x16d   :  { %v347_v1 = vpop.f32.mrf.mxu1 }
 0x16e   :  { %v348_v12 = vadd.f32 %v347_v1, %v293_v61  ;;  %v458_v1 = vstv %s836_s6  ;;  %s488_s6 = sshll.u32 %s837_s7, 4  ;;  %s489_s6 = int_to_ptr.hbm [resolvable:$true] %s488_s6 }
 0x170   :  { %v371_v16 = vmax.f32 %v348_v12, 0.0 }
 0x172   :  { %v427_v24 = vmul.f32 %v390_v2, %v371_v16 }
 0x173   :  { %v362_v6 = vpop.f32.mrf.mxu3 }
 0x174   :  { %v363_v25 = vadd.f32 %v362_v6, %v318_v9  ;;  %v436_v32 = vsel %vm435_vm1, %v427_v24, 0.0 }
 0x175   :  { %v350_v4 = vpop.f32.mrf.mxu1 }
 0x176   :  { %v351_v10 = vadd.f32 %v350_v4, %v298_v62  ;;  %v376_v34 = vmax.f32 %v363_v25, 0.0 }
 0x178   :  { %v372_v15 = vmax.f32 %v351_v10, 0.0  ;;  %v432_v44 = vmul.f32 %v415_v42, %v376_v34 }
 0x17a   :  { %v428_v21 = vmul.f32 %v395_v3, %v372_v15  ;;  %v445_v53 = vsel %vm435_vm1, %v432_v44, 0.0 }
 0x17b   :  { %v365_v13 = vpop.f32.mrf.mxu3 }
 0x17c   :  { %v437_v29 = vsel %vm435_vm1, %v428_v21, 0.0  ;;  %v366_v30 = vadd.f32 %v365_v13, %v323_v20 }
 0x17d   :  { %v353_v8 = vpop.f32.mrf.mxu1  ;;  %v438_v38 = vadd.f32 %v437_v29, %v436_v32 }
 0x17e   :  { %v354_v14 = vadd.f32 %v353_v8, %v303_v63  ;;  %v377_v39 = vmax.f32 %v366_v30, 0.0 }
 0x180   :  { %v373_v18 = vmax.f32 %v354_v14, 0.0  ;;  %v433_v49 = vmul.f32 %v420_v47, %v377_v39 }
 0x182   :  { %v429_v26 = vmul.f32 %v400_v7, %v373_v18  ;;  %v447_v56 = vsel %vm435_vm1, %v433_v49, 0.0 }
 0x183   :  { %v368_v28 = vpop.f32.mrf.mxu3 }
 0x184   :  { %v439_v35 = vsel %vm435_vm1, %v429_v26, 0.0  ;;  %v369_v36 = vadd.f32 %v368_v28, %v328_v27 }
 0x185   :  { %v356_v17 = vpop.f32.mrf.mxu1  ;;  %v440_v43 = vadd.f32 %v439_v35, %v438_v38 }
 0x186   :  { %v357_v19 = vadd.f32 %v356_v17, %v308_v0  ;;  %v378_v45 = vmax.f32 %v369_v36, 0.0 }
 0x188   :  { %v374_v22 = vmax.f32 %v357_v19, 0.0  ;;  %v434_v54 = vmul.f32 %v425_v51, %v378_v45 }
 0x18a   :  { %v430_v31 = vmul.f32 %v405_v11, %v374_v22  ;;  %v449_v58 = vsel %vm435_vm1, %v434_v54, 0.0 }
 0x18c   :  { %v441_v40 = vsel %vm435_vm1, %v430_v31, 0.0 }
 0x18d   :  { %v359_v33 = vpop.f32.mrf.mxu1  ;;  %v442_v48 = vadd.f32 %v441_v40, %v440_v43 }
 0x18e   :  { %v360_v37 = vadd.f32 %v359_v33, %v313_v5 }
 0x190   :  { %v375_v41 = vmax.f32 %v360_v37, 0.0 }
 0x192   :  { %v431_v46 = vmul.f32 %v410_v23, %v375_v41 }
 0x194   :  { %v443_v50 = vsel %vm435_vm1, %v431_v46, 0.0 }
 0x195   :  { %v444_v52 = vadd.f32 %v443_v50, %v442_v48 }
 0x197   :  { %v446_v55 = vadd.f32 %v445_v53, %v444_v52 }
 0x199   :  { %v448_v57 = vadd.f32 %v447_v56, %v446_v55 }
 0x19b   :  { %v450_v59 = vadd.f32 %v449_v58, %v448_v57 }
 0x19d   :  { %v451_v60 = vrot.slane %v450_v59, 4 }
 0x19f   :  { %v452_v61 = vadd.f32 %v451_v60, %v450_v59 }
 0x1a1   :  { %v453_v62 = vrot.slane %v452_v61, 2 }
 0x1a3   :  { %v454_v63 = vadd.f32 %v453_v62, %v452_v61 }
 0x1a5   :  { %v455_v0 = vrot.slane %v454_v63, 1 }
 0x1a7   :  { %v456_v2 = vadd.f32 %v455_v0, %v454_v63 }
 0x1a9   :  { %v459_v3 = vadd.f32 %v458_v1, %v456_v2 }
 0x1ab   :  { %v513_v4 = vmul.f32 -1.442695, %v459_v3 }
 0x1ad   :  { %539 = vpow2.f32 %v513_v4 }
 0x1b3   :  { %v540_v5 = vpop.eup %539 }
 0x1b4   :  { %v463_v6 = vadd.f32 1.0, %v540_v5 }
 0x1b6   :  { %541 = vrcp.f32 %v463_v6  ;;  %v475_v10 = vand.u32 2147483648, %v463_v6  ;;  %v473_v12 = vand.u32 2147483647, %v463_v6  ;;  %vm469_vm3 = vweird.f32 %v463_v6 }
 0x1b8   :  { %v476_v14 = vor.u32 1.1754944e-38, %v475_v10  ;;  %vm474_vm6 = vcmp.eq.f32.partialorder %v473_v12, 8.507059e+37 }
 0x1bc   :  { %v542_v7 = vpop.eup %541 }
 0x1bd   :  { %v465_v8 = vmul.f32 %v542_v7, %v463_v6  ;;  %vm470_vm2 = vweird.f32 %v542_v7 }
 0x1be   :  { %vm471_vm4 = vmor %vm469_vm3, %vm470_vm2 }
 0x1bf   :  { %v466_v9 = vsub.f32 1.0, %v465_v8 }
 0x1c1   :  { %v467_v11 = vmul.f32 %v542_v7, %v466_v9 }
 0x1c3   :  { %v468_v13 = vadd.f32 %v542_v7, %v467_v11 }
 0x1c5   :  { %v472_v15 = vsel %vm471_vm4, %v542_v7, %v468_v13 }
 0x1c6   :  { %v477_v16 = vsel %vm474_vm6, %v476_v14, %v472_v15 }
 0x1c7   :  { %480 = vst.msk [vmem:[#allocation3] sm:$0x1] %vm479_vm5, %v477_v16 }
 0x1c8   :  { %491 = dma.vmem_to_hbm [thread:$0]  %s487_s20, 16, %s489_s6, [#allocation4]  }
 0x1c9   :  { %567 = dma.done.wait [#allocation4], 16  }
 0x1ca   :  { %568 = vsyncadd [#allocation4], 4294967280 }
 0x1cb   :  { %496 = vsyncpa [#allocation4], 1 }

</bundles_post_ra>
